<compile_context>
chip_gen: v6e
topology: v6e:2x2x1
jax: 0.10.0
libtpu: 0.0.40
codegen_flags: <defaults>
</compile_context>

<pallas_src>
import jax
import jax.numpy as jnp
from jax.experimental import pallas as pl
from jax.experimental.pallas import tpu as pltpu


HIDDEN = 64        # logical hidden width (matches the PyTorch module)
HIDDEN_PAD = 128   # hidden padded to a full lane width
DEFAULT_TB = 512   # batch rows per grid step


def qnet_kernel(x_ref, w1_ref, b1_ref, w2_ref, b2_ref, w3_ref, o_ref):
    x = x_ref[...]                                               # (TB, D_in)
    # Layer 1: MXU matmul (bf16 or f32 operands), f32 accumulation;
    # bias + ReLU on the VPU in f32.
    h1 = jnp.dot(x, w1_ref[...], preferred_element_type=jnp.float32)
    h1 = jnp.maximum(h1 + b1_ref[...], 0.0)                      # (TB, 128) f32
    # Layer 2: MXU matmul.
    h2 = jnp.dot(h1.astype(w2_ref.dtype), w2_ref[...],
                 preferred_element_type=jnp.float32)
    h2 = jnp.maximum(h2 + b2_ref[...], 0.0)                      # (TB, 128) f32
    # Layer 3 (64 -> 1): VPU multiply + cross-lane reduce instead of an N=1
    # MXU matmul.  b3 is baked into lane HIDDEN (h2[:, HIDDEN] == 1 via b2,
    # w3[0, HIDDEN] == b3), so no extra scalar add is needed.
    q = jnp.sum(h2 * w3_ref[...], axis=-1)                       # (TB,) f32
    o_ref[...] = q[None, :].astype(o_ref.dtype)                  # lane-dense (1, TB)


def _round_up(n, m):
    return ((n + m - 1) // m) * m


def qnetwork_forward(x, params, *, use_bf16=True, max_tile=DEFAULT_TB):
    """x: (B, obs_dim + act_dim) float32 -> (B, 1) float32."""
    B, D_in = x.shape
    mxu_dtype = jnp.bfloat16 if use_bf16 else jnp.float32

    # Batch tile: multiple of 8 sublanes, capped at max_tile; pad B so the
    # grid covers whole tiles.
    TB = min(max_tile, _round_up(B, 8))
    B_pad = _round_up(B, TB)
    num_tiles = B_pad // TB

    # Wrapper-side weight packing (layout plumbing, not compute):
    #   - pad hidden 64 -> 128 with zeros (ReLU keeps padded lanes at 0),
    #   - bake b3 into a constant-1 h2 lane (lane index HIDDEN).
    w1 = jnp.zeros((D_in, HIDDEN_PAD), mxu_dtype)
    w1 = w1.at[:, :HIDDEN].set(params["w1"].astype(mxu_dtype))
    b1 = jnp.zeros((1, HIDDEN_PAD), jnp.float32)
    b1 = b1.at[:, :HIDDEN].set(params["b1"].reshape(1, HIDDEN))
    w2 = jnp.zeros((HIDDEN_PAD, HIDDEN_PAD), mxu_dtype)
    w2 = w2.at[:HIDDEN, :HIDDEN].set(params["w2"].astype(mxu_dtype))
    b2 = jnp.zeros((1, HIDDEN_PAD), jnp.float32)
    b2 = b2.at[:, :HIDDEN].set(params["b2"].reshape(1, HIDDEN))
    b2 = b2.at[0, HIDDEN].set(1.0)                       # constant-1 lane
    w3 = jnp.zeros((1, HIDDEN_PAD), jnp.float32)
    w3 = w3.at[:, :HIDDEN].set(params["w3"].reshape(1, HIDDEN))
    w3 = w3.at[0, HIDDEN].set(params["b3"].reshape(()))  # bias via the 1-lane

    xp = jnp.zeros((B_pad, D_in), mxu_dtype).at[:B].set(x.astype(mxu_dtype))

    bpe = jnp.dtype(mxu_dtype).itemsize
    cost = pl.CostEstimate(
        flops=2 * B_pad * (D_in * HIDDEN_PAD + HIDDEN_PAD * HIDDEN_PAD
                           + HIDDEN_PAD),
        transcendentals=0,
        bytes_accessed=(B_pad * D_in * bpe                  # x (scales w/ batch)
                        + B_pad * 4                         # output
                        + (D_in + HIDDEN_PAD) * HIDDEN_PAD * bpe  # W1, W2
                        + 3 * HIDDEN_PAD * 4),              # b1, b2, w3
    )

    out = pl.pallas_call(
        qnet_kernel,
        out_shape=jax.ShapeDtypeStruct((num_tiles, TB), jnp.float32),
        grid=(num_tiles,),
        in_specs=[
            pl.BlockSpec((TB, D_in), lambda i: (i, 0)),              # x tile
            pl.BlockSpec((D_in, HIDDEN_PAD), lambda i: (0, 0)),      # W1 (resident)
            pl.BlockSpec((1, HIDDEN_PAD), lambda i: (0, 0)),         # b1
            pl.BlockSpec((HIDDEN_PAD, HIDDEN_PAD), lambda i: (0, 0)),# W2 (resident)
            pl.BlockSpec((1, HIDDEN_PAD), lambda i: (0, 0)),         # b2 (+1 lane)
            pl.BlockSpec((1, HIDDEN_PAD), lambda i: (0, 0)),         # w3 row (+b3)
        ],
        out_specs=pl.BlockSpec((1, TB), lambda i: (i, 0)),           # lane-dense
        compiler_params=pltpu.CompilerParams(
            dimension_semantics=("parallel",)),
        cost_estimate=cost,
    )(xp, w1, b1, w2, b2, w3)

    return out.reshape(B_pad, 1)[:B]


def init_params(key, in_dim, hidden=HIDDEN):
    """Deterministic init mimicking PyTorch nn.Linear (uniform +/- 1/sqrt(fan_in))."""
    ks = jax.random.split(key, 6)

    def linear(kw, kb, fan_in, fan_out):
        bound = 1.0 / jnp.sqrt(jnp.float32(fan_in))
        w = jax.random.uniform(kw, (fan_in, fan_out), jnp.float32, -bound, bound)
        b = jax.random.uniform(kb, (1, fan_out), jnp.float32, -bound, bound)
        return w, b

    w1, b1 = linear(ks[0], ks[1], in_dim, hidden)
    w2, b2 = linear(ks[2], ks[3], hidden, hidden)
    w3, b3 = linear(ks[4], ks[5], hidden, 1)
    return {"w1": w1, "b1": b1, "w2": w2, "b2": b2, "w3": w3, "b3": b3}


def reference_forward(x, p):
    """Pure-f32 reference matching the PyTorch module."""
    h1 = jnp.maximum(x @ p["w1"] + p["b1"], 0.0)
    h2 = jnp.maximum(h1 @ p["w2"] + p["b2"], 0.0)
    return h2 @ p["w3"] + p["b3"]


def reference_forward_bf16(x, p):
    """Same math as the bf16-MXU kernel path: bf16 operands, f32 accumulation."""
    bf = jnp.bfloat16
    h1 = jnp.maximum(
        jnp.dot(x.astype(bf), p["w1"].astype(bf),
                preferred_element_type=jnp.float32) + p["b1"], 0.0)
    h2 = jnp.maximum(
        jnp.dot(h1.astype(bf), p["w2"].astype(bf),
                preferred_element_type=jnp.float32) + p["b2"], 0.0)
    return h2 @ p["w3"] + p["b3"]


if __name__ == "__main__":
    key = jax.random.PRNGKey(0)
    k_x, k_p = jax.random.split(key)

    # Small synthetic env: obs_dim=8, act_dim=3 -> in_dim=11; batch=4.
    obs_dim, act_dim, batch = 8, 3, 4
    in_dim = obs_dim + act_dim

    x = jax.random.normal(k_x, (batch, in_dim), jnp.float32)
    params = init_params(k_p, in_dim, hidden=HIDDEN)

    # Exact f32 path (original module semantics).
    out_f32 = jax.block_until_ready(qnetwork_forward(x, params, use_bf16=False))
    ref_f32 = reference_forward(x, params)
    assert out_f32.shape == (batch, 1)
    assert jnp.allclose(out_f32, ref_f32, atol=1e-3, rtol=1e-3)

    # Default bf16-MXU path (perf guidance for v6e/v7x; f32 VPU math kept).
    out_bf16 = jax.block_until_ready(qnetwork_forward(x, params, use_bf16=True))
    ref_bf16 = reference_forward_bf16(x, params)
    assert out_bf16.shape == (batch, 1)
    assert jnp.allclose(out_bf16, ref_bf16, atol=1e-3, rtol=1e-3)
    assert jnp.allclose(out_bf16, ref_f32, atol=5e-2, rtol=5e-2)

    print("KERNEL_OK")
</pallas_src>

<mosaic_0001>
module attributes {stable_mosaic.version = 11 : i64} {
  func.func @qnet_kernel(%arg0: i32, %arg1: memref<8x11xf32, #tpu.memory_space<vmem>>, %arg2: memref<11x128xf32, #tpu.memory_space<vmem>>, %arg3: memref<1x128xf32, #tpu.memory_space<vmem>>, %arg4: memref<128x128xf32, #tpu.memory_space<vmem>>, %arg5: memref<1x128xf32, #tpu.memory_space<vmem>>, %arg6: memref<1x128xf32, #tpu.memory_space<vmem>>, %arg7: memref<1x8xf32, #tpu.memory_space<vmem>>) attributes {dimension_semantics = [#tpu.dimension_semantics<parallel>], iteration_bounds = array<i64: 1>, scalar_prefetch = 0 : i64, scratch_operands = 0 : i64, tpu.core_type = #tpu.core_type<tc>, window_params = [{transform_indices = @transform_0, window_bounds = array<i64: 8, 11>}, {pipeline_mode = #tpu.pipeline_mode<synchronous>, transform_indices = @transform_1, window_bounds = array<i64: 11, 128>}, {pipeline_mode = #tpu.pipeline_mode<synchronous>, transform_indices = @transform_2, window_bounds = array<i64: 1, 128>}, {pipeline_mode = #tpu.pipeline_mode<synchronous>, transform_indices = @transform_3, window_bounds = array<i64: 128, 128>}, {pipeline_mode = #tpu.pipeline_mode<synchronous>, transform_indices = @transform_4, window_bounds = array<i64: 1, 128>}, {pipeline_mode = #tpu.pipeline_mode<synchronous>, transform_indices = @transform_5, window_bounds = array<i64: 1, 128>}, {transform_indices = @transform_6, window_bounds = array<i64: 1, 8>}]} {
    %c0 = arith.constant 0 : index
    %c0_0 = arith.constant 0 : index
    %0 = vector.load %arg1[%c0, %c0_0] : memref<8x11xf32, #tpu.memory_space<vmem>>, vector<8x11xf32>
    %c0_1 = arith.constant 0 : index
    %c0_2 = arith.constant 0 : index
    %1 = vector.load %arg2[%c0_1, %c0_2] : memref<11x128xf32, #tpu.memory_space<vmem>>, vector<11x128xf32>
    %cst = arith.constant dense<0.000000e+00> : vector<8x128xf32>
    %2 = tpu.matmul %0, %1, %cst {dimension_numbers = #tpu.dot_dimension_numbers<[1], [0], [0], [1], [0, 0, 1, 1], [], []>} : vector<8x11xf32>, vector<11x128xf32>, vector<8x128xf32> -> vector<8x128xf32>
    %c0_3 = arith.constant 0 : index
    %c0_4 = arith.constant 0 : index
    %3 = vector.load %arg3[%c0_3, %c0_4] : memref<1x128xf32, #tpu.memory_space<vmem>>, vector<1x128xf32>
    %4 = vector.broadcast %3 : vector<1x128xf32> to vector<8x128xf32>
    %5 = arith.addf %2, %4 : vector<8x128xf32>
    %cst_5 = arith.constant 0.000000e+00 : f32
    %6 = vector.broadcast %cst_5 : f32 to vector<8x128xf32>
    %7 = arith.maximumf %5, %6 : vector<8x128xf32>
    %c0_6 = arith.constant 0 : index
    %c0_7 = arith.constant 0 : index
    %8 = vector.load %arg4[%c0_6, %c0_7] : memref<128x128xf32, #tpu.memory_space<vmem>>, vector<128x128xf32>
    %cst_8 = arith.constant dense<0.000000e+00> : vector<8x128xf32>
    %9 = tpu.matmul %7, %8, %cst_8 {dimension_numbers = #tpu.dot_dimension_numbers<[1], [0], [0], [1], [0, 0, 1, 1], [], []>} : vector<8x128xf32>, vector<128x128xf32>, vector<8x128xf32> -> vector<8x128xf32>
    %c0_9 = arith.constant 0 : index
    %c0_10 = arith.constant 0 : index
    %10 = vector.load %arg5[%c0_9, %c0_10] : memref<1x128xf32, #tpu.memory_space<vmem>>, vector<1x128xf32>
    %11 = vector.broadcast %10 : vector<1x128xf32> to vector<8x128xf32>
    %12 = arith.addf %9, %11 : vector<8x128xf32>
    %cst_11 = arith.constant 0.000000e+00 : f32
    %13 = vector.broadcast %cst_11 : f32 to vector<8x128xf32>
    %14 = arith.maximumf %12, %13 : vector<8x128xf32>
    %c0_12 = arith.constant 0 : index
    %c0_13 = arith.constant 0 : index
    %15 = vector.load %arg6[%c0_12, %c0_13] : memref<1x128xf32, #tpu.memory_space<vmem>>, vector<1x128xf32>
    %16 = vector.broadcast %15 : vector<1x128xf32> to vector<8x128xf32>
    %17 = arith.mulf %14, %16 : vector<8x128xf32>
    %cst_14 = arith.constant dense<0.000000e+00> : vector<8xf32>
    %18 = vector.multi_reduction <add>, %17, %cst_14 [1] : vector<8x128xf32> to vector<8xf32>
    %19 = vector.shape_cast %18 : vector<8xf32> to vector<1x8xf32>
    %c0_15 = arith.constant 0 : index
    %c0_16 = arith.constant 0 : index
    %20 = vector.load %arg7[%c0_15, %c0_16] : memref<1x8xf32, #tpu.memory_space<vmem>>, vector<1x8xf32>
    tpu.vector_store %arg7[%c0_15, %c0_16], %19 {strides = array<i32>} : memref<1x8xf32, #tpu.memory_space<vmem>>, vector<1x8xf32>,
    return
  }
  func.func @transform_0(%arg0: i32) -> (i32, i32) {
    %c0_i32 = arith.constant 0 : i32
    %c0_i32_0 = arith.constant 0 : i32
    return %arg0, %c0_i32 : i32, i32
  }
  func.func @transform_1(%arg0: i32) -> (i32, i32) {
    %c0_i32 = arith.constant 0 : i32
    %c0_i32_0 = arith.constant 0 : i32
    %c0_i32_1 = arith.constant 0 : i32
    return %c0_i32, %c0_i32_0 : i32, i32
  }
  func.func @transform_2(%arg0: i32) -> (i32, i32) {
    %c0_i32 = arith.constant 0 : i32
    %c0_i32_0 = arith.constant 0 : i32
    %c0_i32_1 = arith.constant 0 : i32
    return %c0_i32, %c0_i32_0 : i32, i32
  }
  func.func @transform_3(%arg0: i32) -> (i32, i32) {
    %c0_i32 = arith.constant 0 : i32
    %c0_i32_0 = arith.constant 0 : i32
    %c0_i32_1 = arith.constant 0 : i32
    return %c0_i32, %c0_i32_0 : i32, i32
  }
  func.func @transform_4(%arg0: i32) -> (i32, i32) {
    %c0_i32 = arith.constant 0 : i32
    %c0_i32_0 = arith.constant 0 : i32
    %c0_i32_1 = arith.constant 0 : i32
    return %c0_i32, %c0_i32_0 : i32, i32
  }
  func.func @transform_5(%arg0: i32) -> (i32, i32) {
    %c0_i32 = arith.constant 0 : i32
    %c0_i32_0 = arith.constant 0 : i32
    %c0_i32_1 = arith.constant 0 : i32
    return %c0_i32, %c0_i32_0 : i32, i32
  }
  func.func @transform_6(%arg0: i32) -> (i32, i32) {
    %c0_i32 = arith.constant 0 : i32
    %c0_i32_0 = arith.constant 0 : i32
    return %arg0, %c0_i32 : i32, i32
  }
}

</mosaic_0001>

<bundles_post_ra>
// kernel: tpu_custom_call.1
= control target key start
LH: loop header
LB: loop body
LE: loop exit
PB: predicated region body
PF: predicated region fallthrough
CT: control target
= control target key end

     0   :  { %11 = vsyncpa [#allocation3], 0  ;;  %s507_s0 = inlined_call_operand.hbm [shape: f32[8,11], index: 0, kind: input, shape index: {}]   ;;  %s508_s1 = inlined_call_operand.hbm [shape: f32[11,128], index: 1, kind: input, shape index: {}]   ;;  %s509_s2 = inlined_call_operand.vmem [shape: f32[1,128], index: 2, kind: input, shape index: {}]   ;;  %s510_s3 = inlined_call_operand.hbm [shape: f32[128,128], index: 3, kind: input, shape index: {}]   ;;  %s511_s4 = inlined_call_operand.vmem [shape: f32[1,128], index: 4, kind: input, shape index: {}]   ;;  %s512_s5 = inlined_call_operand.vmem [shape: f32[1,128], index: 5, kind: input, shape index: {}]   ;;  %s513_s6 = inlined_call_operand.hbm [shape: f32[1,8], index: 6, kind: output, shape index: {}]  }
   0x1   :  { %12 = vsyncpa [#allocation6], 0 }
   0x2   :  { %13 = vsyncpa [#allocation4], 0  ;;  %s443_s21 = smov [#allocation5]  }
   0x3   :  { %s29_s22 = sshll.u32 %s443_s21, 4  ;;  %s30_s22 = int_to_ptr.vmem [resolvable:$true] %s29_s22 }
   0x4   :  { %s365_s23 = scalar_lea.vmem %s30_s22, 256  ;;  %p370_p1 = scmp.lt.s32.totalorder %s30_s22, %s30_s22 }
   0x5   :  { %p366_p0 = scmp.ne.s32.totalorder %s30_s22, %s365_s23  ;;  %p371_p2 = scmp.lt.s32.totalorder %s365_s23, %s365_s23 }
   0x7   :  { %p372_p3 = por %p371_p2, %p370_p1 }
   0x9   :  { %p373_p4 = pnand %p372_p3, %p366_p0 }
   0xb   :  { %376 = shalt.err (!%p373_p4)
}
   0xc   :  { %s444_s24 = smov 128   ;;  %s445_s25 = smov 8  }
   0xd   :  { %35 = dma.hbm_to_vmem [thread:$0]  %s508_s1, 256, %s30_s22, [#allocation6], %s444_s24, %s444_s24, %s445_s25  }
   0xe   :  { %s446_s28 = smov [#allocation2]   ;;  %s447_s30 = smov [#allocation7]  }
   0xf   :  { %s20_s29 = sshll.u32 %s446_s28, 4  ;;  %s43_s7 = sshll.u32 %s447_s30, 4  ;;  %s21_s29 = int_to_ptr.vmem [resolvable:$true] %s20_s29  ;;  %s44_s7 = int_to_ptr.vmem [resolvable:$true] %s43_s7 }
  0x10   :  { %s385_s8 = scalar_lea.vmem %s21_s29, 128  ;;  %p390_p6 = scmp.lt.s32.totalorder %s21_s29, %s21_s29 }
  0x11   :  { %p386_p5 = scmp.ne.s32.totalorder %s21_s29, %s385_s8  ;;  %p391_p7 = scmp.lt.s32.totalorder %s385_s8, %s385_s8 }
  0x13   :  { %p392_p8 = por %p391_p7, %p390_p6 }
  0x15   :  { %p393_p9 = pnand %p392_p8, %p386_p5 }
  0x17   :  { %396 = shalt.err (!%p393_p9)
}
  0x18   :  { %23 = dma.hbm_to_vmem [thread:$0]  %s507_s0, 128, %s21_s29, [#allocation3]  }
  0x19   :  { %s405_s11 = scalar_lea.vmem %s44_s7, 2048  ;;  %p410_p11 = scmp.lt.s32.totalorder %s44_s7, %s44_s7 }
  0x1a   :  { %p406_p10 = scmp.ne.s32.totalorder %s44_s7, %s405_s11  ;;  %p411_p12 = scmp.lt.s32.totalorder %s405_s11, %s405_s11 }
  0x1c   :  { %p412_p13 = por %p411_p12, %p410_p11 }
  0x1e   :  { %p413_p0 = pnand %p412_p13, %p406_p10 }
  0x20   :  { %416 = shalt.err (!%p413_p0)
}
  0x21   :  { %49 = dma.hbm_to_vmem [thread:$0]  %s510_s3, 2048, %s44_s7, [#allocation6], %s444_s24, %s444_s24, %s445_s25  }
  0x22   :  { %437 = dma.done.wait [#allocation3], 128  }
  0x23   :  { %438 = vsyncadd [#allocation3], 4294967168 }
  0x24   :  { %439 = dma.done.wait [#allocation6], 2304  }
  0x25   :  { %440 = vsyncadd [#allocation6], 4294964992  ;;  %v448_v0 = vmov 0.0   ;;  %vm449_vm0 = vmmov 0   ;;  %vm77_vm1 = vcmask 1042432   ;;  %v64_v2 = vld [vmem:[#allocation5] sm:$0xff]  ;;  %v257_v32 = vlaneseq }
  0x26   :  { %307 = vmatprep.subr.mxu0 %v448_v0  ;;  %311 = vmatprep.mubr.msk.f32.mxu0 %vm449_vm0, %v448_v0  ;;  %v65_v1 = vld [vmem:[#allocation5 + $0x8] sm:$0x7]  ;;  %v63_v3 = vld [vmem:[#allocation2] sm:$0xff]  ;;  %vm73_vm2 = vcmask 89088   ;;  %v166_v5 = vld [vmem:[#allocation7 + $0x70] sm:$0xff]  ;;  %vm264_vm3 = vcmask 57344  }
  0x27   :  { %314 = vmatprep.subr.mxu1 %v448_v0  ;;  %346 = vmatprep.mubr.msk.f32.mxu1 %vm449_vm0, %v448_v0  ;;  %v167_v4 = vld [vmem:[#allocation7 + $0x78] sm:$0xff]  ;;  %v165_v6 = vld [vmem:[#allocation7 + $0x68] sm:$0xff]  ;;  %v164_v7 = vld [vmem:[#allocation7 + $0x60] sm:$0xff]  ;;  %v258_v33 = vand.u32 127, %v257_v32  ;;  %v260_v34 = vshrl.u32 %v257_v32, 7 }
  0x28   :  { %308 = vmatpush3.msk.msra.mxu0 %vm77_vm1, %v65_v1  ;;  %315 = vmatpush3.msra.mxu1 %v167_v4  ;;  %v163_v8 = vld [vmem:[#allocation7 + $0x58] sm:$0xff]  ;;  %v162_v9 = vld [vmem:[#allocation7 + $0x50] sm:$0xff]  ;;  %v161_v10 = vld [vmem:[#allocation7 + $0x48] sm:$0xff] }
  0x29   :  { %309 = vmatprep.subr.mxu0 %v448_v0  ;;  %316 = vmatprep.subr.mxu1 %v448_v0  ;;  %v160_v11 = vld [vmem:[#allocation7 + $0x40] sm:$0xff]  ;;  %v159_v12 = vld [vmem:[#allocation7 + $0x38] sm:$0xff]  ;;  %v158_v13 = vld [vmem:[#allocation7 + $0x30] sm:$0xff]  ;;  %v261_v35 = vsub.s32 %v258_v33, %v260_v34 }
  0x2a   :  { %310 = vmatpush3.msra.mxu0 %v64_v2  ;;  %317 = vmatpush3.msra.mxu1 %v166_v5  ;;  %v157_v14 = vld [vmem:[#allocation7 + $0x28] sm:$0xff]  ;;  %v156_v15 = vld [vmem:[#allocation7 + $0x20] sm:$0xff]  ;;  %v155_v16 = vld [vmem:[#allocation7 + $0x18] sm:$0xff] }
  0x2b   :  { %312 = vmatmul.mubr.msk.f32.vlgmr.msra.gmra.mxu0 %vm73_vm2, %v63_v3  ;;  %318 = vmatprep.subr.mxu1 %v448_v0  ;;  %v154_v17 = vld [vmem:[#allocation7 + $0x10] sm:$0xff]  ;;  %v153_v18 = vld [vmem:[#allocation7 + $0x8] sm:$0xff]  ;;  %v152_v19 = vld [vmem:[#allocation7] sm:$0xff] }
  0x2c   :  { %319 = vmatpush3.msra.mxu1 %v165_v6  ;;  %v282_v20 = vld [vmem:[%s509_s2] ss:$0 sm:$0xff]  ;;  %s450_s2 = smov [#allocation8]  }
  0x2d   :  { %320 = vmatprep.subr.mxu1 %v448_v0  ;;  %v285_v25 = vld [vmem:[%s511_s4] ss:$0 sm:$0xff]  ;;  %s272_s17 = sshll.u32 %s450_s2, 4  ;;  %s273_s17 = int_to_ptr.vmem [resolvable:$true] %s272_s17 }
  0x2e   :  { %321 = vmatpush3.msra.mxu1 %v164_v7  ;;  %v286_v29 = vld [vmem:[%s512_s5] ss:$0 sm:$0xff]  ;;  %s417_s4 = scalar_lea.vmem %s273_s17, 16  ;;  %s421_s18 = scalar_lea.vmem %s273_s17, 32 }
  0x2f   :  { %322 = vmatprep.subr.mxu1 %v448_v0  ;;  %p418_p1 = scmp.ne.s32.totalorder %s273_s17, %s417_s4  ;;  %p422_p2 = scmp.lt.s32.totalorder %s273_s17, %s273_s17 }
  0x30   :  { %323 = vmatpush3.msra.mxu1 %v163_v8  ;;  %p423_p3 = scmp.lt.s32.totalorder %s421_s18, %s417_s4 }
  0x31   :  { %324 = vmatprep.subr.mxu1 %v448_v0 }
  0x32   :  { %325 = vmatpush3.msra.mxu1 %v162_v9  ;;  %p424_p4 = por %p423_p3, %p422_p2 }
  0x33   :  { %326 = vmatprep.subr.mxu1 %v448_v0 }
  0x34   :  { %327 = vmatpush3.msra.mxu1 %v161_v10  ;;  %p425_p5 = pnand %p424_p4, %p418_p1 }
  0x35   :  { %328 = vmatprep.subr.mxu1 %v448_v0 }
  0x36   :  { %329 = vmatpush3.msra.mxu1 %v160_v11 }
  0x37   :  { %330 = vmatprep.subr.mxu1 %v448_v0 }
  0x38   :  { %331 = vmatpush3.msra.mxu1 %v159_v12 }
  0x39   :  { %332 = vmatprep.subr.mxu1 %v448_v0 }
  0x3a   :  { %333 = vmatpush3.msra.mxu1 %v158_v13 }
  0x3b   :  { %334 = vmatprep.subr.mxu1 %v448_v0 }
  0x3c   :  { %335 = vmatpush3.msra.mxu1 %v157_v14 }
  0x3d   :  { %336 = vmatprep.subr.mxu1 %v448_v0 }
  0x3e   :  { %337 = vmatpush3.msra.mxu1 %v156_v15 }
  0x3f   :  { %338 = vmatprep.subr.mxu1 %v448_v0 }
  0x40   :  { %339 = vmatpush3.msra.mxu1 %v155_v16 }
  0x41   :  { %340 = vmatprep.subr.mxu1 %v448_v0 }
  0x42   :  { %341 = vmatpush3.msra.mxu1 %v154_v17 }
  0x43   :  { %342 = vmatprep.subr.mxu1 %v448_v0 }
  0x44   :  { %343 = vmatpush3.msra.mxu1 %v153_v18 }
  0x45   :  { %344 = vmatprep.subr.mxu1 %v448_v0 }
  0x46   :  { %345 = vmatpush3.msra.mxu1 %v152_v19 }
  0xeb   :  { %v147_v21 = vpop.f32.mrf.mxu0 }
  0xec   :  { %v148_v22 = vadd.f32 %v282_v20, %v147_v21 }
  0xed   :  { %v313_v23 = vpop.f32.mrf.mxu0 }
  0xee   :  { %v151_v24 = vmax.f32 %v148_v22, 0.0 }
  0xf0   :  { %347 = vmatmul.mubr.f32.vlgmr.msra.gmra.mxu1 %v151_v24 }
 0x1b0   :  { %v241_v26 = vpop.f32.mrf.mxu1 }
 0x1b1   :  { %v242_v27 = vadd.f32 %v285_v25, %v241_v26 }
 0x1b2   :  { %v348_v28 = vpop.f32.mrf.mxu1 }
 0x1b3   :  { %v245_v30 = vmax.f32 %v242_v27, 0.0 }
 0x1b5   :  { %v253_v31 = vmul.f32 %v286_v29, %v245_v30 }
 0x1b7   :  { %254 = vadd.xlane.f32.xlu0 %v253_v31 }
 0x240   :  { %v255_v36 = vpop.xlane.xlu0 %254 }
 0x241   :  { %v262_v37 = vrot.slane %v255_v36, %v261_v35 }
 0x243   :  { %265 = vst.msk [vmem:[#allocation8] sm:$0x1] %vm264_vm3, %v262_v37 }
 0x244   :  { %428 = shalt.err (!%p425_p5)
}
 0x245   :  { %275 = dma.vmem_to_hbm [thread:$0]  %s273_s17, 16, %s513_s6, [#allocation4]  }
 0x246   :  { %441 = dma.done.wait [#allocation4], 16  }
 0x247   :  { %442 = vsyncadd [#allocation4], 4294967280 }
 0x248   :  { %279 = vsyncpa [#allocation3], 1 }
 0x249   :  { %280 = vsyncpa [#allocation6], 1 }
 0x24a   :  { %281 = vsyncpa [#allocation4], 1 }

</bundles_post_ra>
